<compile_context>
chip_gen: v7x
topology: tpu7x:2x2x1
jax: 0.10.0
libtpu: 0.0.40
codegen_flags: <defaults>
</compile_context>

<pallas_src>
import functools
import math

import jax
import jax.numpy as jnp
from jax import lax
from jax.experimental import pallas as pl
from jax.experimental.pallas import tpu as pltpu


def _round_up(a, b):
    return ((a + b - 1) // b) * b


def _vmem_budget():
    """Returns (vmem_limit_bytes, physical_capacity) with a safe fallback."""
    cap = None
    try:
        cap = getattr(pltpu.get_tpu_info(), "vmem_capacity_bytes", None)
    except Exception:
        cap = None
    if not cap:
        cap = 64 * 1024 * 1024          # v7x per-TensorCore VMEM (smallest)
    cap = int(cap)
    return (cap * 3) // 4, cap


def _label_smoothing_kernel(tgt_ref, cw_ref, x_ref, out_ref, *,
                            conf_minus_smooth):
    j = pl.program_id(1)                 # vocab-tile index (inner grid axis)

    @pl.when(j == 0)
    def _():
        out_ref[...] = jnp.zeros_like(out_ref)

    x = x_ref[...].astype(jnp.float32)   # (rt, tv) log-probs
    rt, tv = x.shape

    cw = cw_ref[...]                     # (1, tv) f32: smooth_val or 0
    tgt = tgt_ref[...]                   # (rt, 1) int32; -1 marks masked rows
    row_valid = tgt >= 0                 # covers padding rows AND OOB tail rows
    tgt_local = tgt - j * tv             # target column in tile-local coords

    lane = lax.broadcasted_iota(jnp.int32, (rt, tv), 1)
    is_tgt = lane == tgt_local           # (rt, tv)

    # Per-element weight == true_dist value.  Column weight is smooth_val for
    # real non-padding columns and 0 for the padding column / OOB tail; the
    # target column is bumped to `confidence`; invalid rows are zeroed.
    w = cw + jnp.where(is_tgt, jnp.float32(conf_minus_smooth), jnp.float32(0.0))
    w = jnp.where(row_valid, w, jnp.float32(0.0))

    # KLDivLoss zeroes entries with true_dist == 0, so use a select (NOT a
    # multiply): garbage in OOB lanes/rows and -inf log-probs at zero-weight
    # columns are discarded instead of producing NaN (also covers the
    # smoothing == 0.0 / 1.0 edge cases where one weight is exactly 0).
    term = jnp.where(w != 0.0, w * x, jnp.float32(0.0))

    # Fold sublane row-blocks: pure vreg-to-vreg VALU adds.
    r = jnp.sum(term.reshape(rt // 8, 8, tv), axis=0)        # (8, tv)
    # Fold 128-wide lane blocks with static aligned slices (no relayout).
    folded = r[:, 0:128]
    for c in range(1, tv // 128):
        folded = folded + r[:, c * 128:(c + 1) * 128]

    out_ref[...] += folded               # single-vreg accumulator in the output


def label_smoothing_loss(x, target, *, padding_idx, smoothing,
                         row_tile=256, v_tile=None):
    """x: [N, V] f32/bf16 log-probs, target: [N] int.

    Returns the scalar nn.KLDivLoss(reduction='sum')(x, smoothed_true_dist).
    """
    N, V = x.shape
    assert V > 2, "smoothing/(V-2) is undefined for V <= 2"

    confidence = 1.0 - float(smoothing)
    smooth_val = float(smoothing) / (V - 2)

    vmem_limit, vmem_cap = _vmem_budget()
    if v_tile is None:
        # Wider vocab tiles on 128-MiB-VMEM parts (v5e/v6e); modest on v7x.
        v_tile = 8192 if vmem_cap >= (100 << 20) else 4096

    rt = min(_round_up(row_tile, 8), _round_up(N, 8))
    tv = min(_round_up(v_tile, 128), _round_up(V, 128))
    nr = pl.cdiv(N, rt)                  # row blocks (partial last block OK)
    nj = pl.cdiv(V, tv)                  # vocab blocks (partial last block OK)

    # ---- O(N) / O(V) side inputs; x itself is never copied or padded -------
    n_rows_pad = nr * rt
    tgt = target.astype(jnp.int32)
    valid_row = tgt != padding_idx
    tgt_masked = jnp.where(valid_row, tgt, -1)            # -1 == masked row
    tgt2d = jnp.pad(tgt_masked, (0, n_rows_pad - N),
                    constant_values=-1).reshape(n_rows_pad, 1)

    v_cols_pad = nj * tv
    cols = jnp.arange(v_cols_pad, dtype=jnp.int32)
    cw = jnp.where((cols < V) & (cols != padding_idx), smooth_val, 0.0)
    cw = cw.astype(jnp.float32).reshape(1, v_cols_pad)

    kernel = functools.partial(_label_smoothing_kernel,
                               conf_minus_smooth=confidence - smooth_val)

    itemsize = jnp.dtype(x.dtype).itemsize
    out = pl.pallas_call(
        kernel,
        out_shape=jax.ShapeDtypeStruct((nr * 8, 128), jnp.float32),
        grid_spec=pltpu.PrefetchScalarGridSpec(
            num_scalar_prefetch=0,
            grid=(nr, nj),
            in_specs=[
                # targets / column weights are not refetched along the other axis
                pl.BlockSpec((rt, 1), lambda i, j: (i, 0)),
                pl.BlockSpec((1, tv), lambda i, j: (0, j)),
                pl.BlockSpec((rt, tv), lambda i, j: (i, j)),   # x: one stream
            ],
            out_specs=pl.BlockSpec((8, 128), lambda i, j: (i, 0)),
        ),
        compiler_params=pltpu.CompilerParams(
            dimension_semantics=("parallel", "arbitrary"),
            vmem_limit_bytes=vmem_limit),
        cost_estimate=pl.CostEstimate(
            flops=6 * N * V,
            transcendentals=0,
            bytes_accessed=(N * V * itemsize + n_rows_pad * 4
                            + v_cols_pad * 4 + nr * 8 * 128 * 4)),
    )(tgt2d, cw, x)

    # loss = sum(t*log t) - sum(t*x); the first term is a per-valid-row
    # constant (t in {confidence, smooth_val}) computed here (no logs in the
    # kernel); the second term is the kernel's accumulation.
    row_const = 0.0
    if confidence > 0.0:
        row_const += confidence * math.log(confidence)
    if smooth_val > 0.0:
        row_const += (V - 2) * smooth_val * math.log(smooth_val)
    n_valid = jnp.sum(valid_row.astype(jnp.float32))
    return n_valid * jnp.float32(row_const) - jnp.sum(out)


def _reference(x, target, padding_idx, smoothing):
    """Pure-JAX reference mirroring the PyTorch forward."""
    N, V = x.shape
    confidence = 1.0 - smoothing
    smooth_val = smoothing / (V - 2)
    true_dist = jnp.full((N, V), smooth_val, dtype=jnp.float32)
    true_dist = true_dist.at[jnp.arange(N), target].set(confidence)
    true_dist = true_dist.at[:, padding_idx].set(0.0)
    true_dist = jnp.where((target == padding_idx)[:, None], 0.0, true_dist)
    term = jnp.where(true_dist > 0,
                     true_dist * (jnp.log(true_dist) - x), 0.0)
    return jnp.sum(term)


if __name__ == "__main__":
    key = jax.random.PRNGKey(0)
    k1, k2 = jax.random.split(key)

    N = 16          # B * token_num
    V = 32          # vocab size
    padding_idx = 0
    smoothing = 0.1

    logits = jax.random.normal(k1, (N, V), dtype=jnp.float32)
    x = jax.nn.log_softmax(logits, axis=-1)                 # log-probabilities
    target = jax.random.randint(k2, (N,), 0, V, dtype=jnp.int32)
    # force a couple of padding rows so the row-masking path is exercised
    target = target.at[3].set(padding_idx).at[10].set(padding_idx)

    loss = label_smoothing_loss(x, target,
                                padding_idx=padding_idx,
                                smoothing=smoothing)
    loss = jax.block_until_ready(loss)

    ref = _reference(x, target, padding_idx, smoothing)
    assert jnp.allclose(loss, ref, rtol=1e-5, atol=1e-5), (loss, ref)

    print("KERNEL_OK")
</pallas_src>

<mosaic_0001>
module attributes {stable_mosaic.version = 11 : i64} {
  func.func @_label_smoothing_kernel(%arg0: i32, %arg1: i32, %arg2: memref<16x1xi32, #tpu.memory_space<vmem>>, %arg3: memref<1x128xf32, #tpu.memory_space<vmem>>, %arg4: memref<16x128xf32, #tpu.memory_space<vmem>>, %arg5: memref<8x128xf32, #tpu.memory_space<vmem>>) attributes {dimension_semantics = [#tpu.dimension_semantics<parallel>, #tpu.dimension_semantics<arbitrary>], iteration_bounds = array<i64: 1, 1>, scalar_prefetch = 0 : i64, scratch_operands = 0 : i64, tpu.core_type = #tpu.core_type<tc>, window_params = [{transform_indices = @transform_0, window_bounds = array<i64: 16, 1>}, {transform_indices = @transform_1, window_bounds = array<i64: 1, 128>}, {transform_indices = @transform_2, window_bounds = array<i64: 16, 128>}, {transform_indices = @transform_3, window_bounds = array<i64: 8, 128>}]} {
    %c0_i32 = arith.constant 0 : i32
    %0 = arith.cmpi eq, %arg1, %c0_i32 : i32
    %1 = arith.extui %0 : i1 to i32
    %c0_i32_0 = arith.constant 0 : i32
    %2 = arith.cmpi ne, %1, %c0_i32_0 : i32
    scf.if %2 {
      %cst_16 = arith.constant 0.000000e+00 : f32
      %33 = vector.broadcast %cst_16 : f32 to vector<8x128xf32>
      %c0_17 = arith.constant 0 : index
      %c0_18 = arith.constant 0 : index
      %34 = vector.load %arg5[%c0_17, %c0_18] : memref<8x128xf32, #tpu.memory_space<vmem>>, vector<8x128xf32>
      tpu.vector_store %arg5[%c0_17, %c0_18], %33 {strides = array<i32>} : memref<8x128xf32, #tpu.memory_space<vmem>>, vector<8x128xf32>,
    } else {
    }
    %c0 = arith.constant 0 : index
    %c0_1 = arith.constant 0 : index
    %3 = vector.load %arg4[%c0, %c0_1] : memref<16x128xf32, #tpu.memory_space<vmem>>, vector<16x128xf32>
    %c0_2 = arith.constant 0 : index
    %c0_3 = arith.constant 0 : index
    %4 = vector.load %arg3[%c0_2, %c0_3] : memref<1x128xf32, #tpu.memory_space<vmem>>, vector<1x128xf32>
    %c0_4 = arith.constant 0 : index
    %c0_5 = arith.constant 0 : index
    %5 = vector.load %arg2[%c0_4, %c0_5] : memref<16x1xi32, #tpu.memory_space<vmem>>, vector<16x1xi32>
    %c0_i32_6 = arith.constant 0 : i32
    %6 = vector.broadcast %c0_i32_6 : i32 to vector<16x1xi32>
    %7 = arith.cmpi sge, %5, %6 : vector<16x1xi32>
    %c128_i32 = arith.constant 128 : i32
    %8 = arith.muli %arg1, %c128_i32 : i32
    %9 = vector.broadcast %8 : i32 to vector<16x1xi32>
    %10 = arith.subi %5, %9 : vector<16x1xi32>
    %11 = tpu.iota {dimensions = array<i32: 1>} : vector<16x128xi32>
    %12 = vector.broadcast %10 : vector<16x1xi32> to vector<16x128xi32>
    %13 = arith.cmpi eq, %11, %12 : vector<16x128xi32>
    %cst = arith.constant 0.896666646 : f32
    %cst_7 = arith.constant 0.000000e+00 : f32
    %14 = vector.broadcast %cst : f32 to vector<16x128xf32>
    %15 = vector.broadcast %cst_7 : f32 to vector<16x128xf32>
    %16 = arith.select %13, %14, %15 : vector<16x128xi1>, vector<16x128xf32>
    %17 = vector.broadcast %4 : vector<1x128xf32> to vector<16x128xf32>
    %18 = arith.addf %17, %16 : vector<16x128xf32>
    %cst_8 = arith.constant 0.000000e+00 : f32
    %19 = vector.shape_cast %7 : vector<16x1xi1> to vector<16x1xi1>
    %20 = vector.broadcast %19 : vector<16x1xi1> to vector<16x128xi1>
    %21 = vector.broadcast %cst_8 : f32 to vector<16x128xf32>
    %22 = arith.select %20, %18, %21 : vector<16x128xi1>, vector<16x128xf32>
    %cst_9 = arith.constant 0.000000e+00 : f32
    %23 = vector.broadcast %cst_9 : f32 to vector<16x128xf32>
    %24 = arith.cmpf one, %22, %23 : vector<16x128xf32>
    %25 = arith.mulf %22, %3 : vector<16x128xf32>
    %cst_10 = arith.constant 0.000000e+00 : f32
    %26 = vector.broadcast %cst_10 : f32 to vector<16x128xf32>
    %27 = arith.select %24, %25, %26 : vector<16x128xi1>, vector<16x128xf32>
    %28 = vector.shape_cast %27 : vector<16x128xf32> to vector<2x8x128xf32>
    %cst_11 = arith.constant dense<0.000000e+00> : vector<8x128xf32>
    %29 = vector.multi_reduction <add>, %28, %cst_11 [0] : vector<2x8x128xf32> to vector<8x128xf32>
    %c0_12 = arith.constant 0 : index
    %c0_13 = arith.constant 0 : index
    %30 = vector.load %arg5[%c0_12, %c0_13] : memref<8x128xf32, #tpu.memory_space<vmem>>, vector<8x128xf32>
    %31 = arith.addf %30, %29 : vector<8x128xf32>
    %c0_14 = arith.constant 0 : index
    %c0_15 = arith.constant 0 : index
    %32 = vector.load %arg5[%c0_14, %c0_15] : memref<8x128xf32, #tpu.memory_space<vmem>>, vector<8x128xf32>
    tpu.vector_store %arg5[%c0_14, %c0_15], %31 {strides = array<i32>} : memref<8x128xf32, #tpu.memory_space<vmem>>, vector<8x128xf32>,
    return
  }
  func.func @transform_0(%arg0: i32, %arg1: i32) -> (i32, i32) {
    %c0_i32 = arith.constant 0 : i32
    %c0_i32_0 = arith.constant 0 : i32
    return %arg0, %c0_i32 : i32, i32
  }
  func.func @transform_1(%arg0: i32, %arg1: i32) -> (i32, i32) {
    %c0_i32 = arith.constant 0 : i32
    %c0_i32_0 = arith.constant 0 : i32
    return %c0_i32, %arg1 : i32, i32
  }
  func.func @transform_2(%arg0: i32, %arg1: i32) -> (i32, i32) {
    %c0_i32 = arith.constant 0 : i32
    return %arg0, %arg1 : i32, i32
  }
  func.func @transform_3(%arg0: i32, %arg1: i32) -> (i32, i32) {
    %c0_i32 = arith.constant 0 : i32
    %c0_i32_0 = arith.constant 0 : i32
    return %arg0, %c0_i32 : i32, i32
  }
}

</mosaic_0001>

<bundles_post_ra>
// kernel: tpu_custom_call.1
= control target key start
LH: loop header
LB: loop body
LE: loop exit
PB: predicated region body
PF: predicated region fallthrough
CT: control target
= control target key end

     0   :  { %s167_s0 = inlined_call_operand.vmem [shape: s32[16,1], index: 0, kind: input, shape index: {}]   ;;  %s168_s1 = inlined_call_operand.vmem [shape: f32[1,128], index: 1, kind: input, shape index: {}]   ;;  %s169_s2 = inlined_call_operand.vmem [shape: f32[16,32], index: 2, kind: input, shape index: {}]   ;;  %s170_s3 = inlined_call_operand.hbm [shape: f32[8,128], index: 3, kind: output, shape index: {}]  }
   0x1   :  { %v23_v0 = vld [vmem:[%s167_s0] sm:$0xff]  ;;  %v24_v1 = vld [vmem:[%s167_s0 + $0x8] sm:$0xff] }
   0x2   :  { %8 = vsyncpa [#allocation3], 0  ;;  %v117_v2 = vmov 0   ;;  %vm25_vm0 = vcmp.ge.s32.totalorder %v23_v0, 0  ;;  %vm26_vm1 = vcmp.ge.s32.totalorder %v24_v1, 0  ;;  %v31_v5 = vlaneseq  ;;  %v20_v14 = vld [vmem:[%s169_s2] sm:$0xff] }
   0x3   :  { %91 = vset.pattern.permute.xlu0 %v117_v2  ;;  %92 = vset.pattern.permute.xlu1 %v117_v2  ;;  %v51_v3 = vsel %vm25_vm0, 1, %v117_v2  ;;  %v52_v4 = vsel %vm26_vm1, 1, %v117_v2  ;;  %v87_v8 = vld [vmem:[%s168_s1] ss:$0 sm:$0xff]  ;;  %v118_v10 = vmov 0.0   ;;  %v21_v19 = vld [vmem:[%s169_s2 + $0x8] sm:$0xff] }
   0x4   :  { %34 = vperm.xlu0 %91, %v23_v0   ;;  %54 = vperm.xlu1 %92, %v51_v3   ;;  %v32_v6 = vand.u32 127, %v31_v5  ;;  %s119_s1 = smov [#allocation2]  }
   0x5   :  { %s79_s21 = sshll.u32 %s119_s1, 4  ;;  %s80_s21 = int_to_ptr.vmem [resolvable:$true] %s79_s21 }
   0x6   :  { %s93_s22 = scalar_lea.vmem %s80_s21, 128  ;;  %p98_p1 = scmp.lt.s32.totalorder %s80_s21, %s80_s21 }
   0x7   :  { %p94_p0 = scmp.ne.s32.totalorder %s80_s21, %s93_s22  ;;  %p99_p2 = scmp.lt.s32.totalorder %s93_s22, %s93_s22 }
   0x8   :  { %37 = vperm.xlu0 %91, %v24_v1   ;;  %57 = vperm.xlu1 %92, %v52_v4  }
   0x9   :  { %p100_p3 = por %p99_p2, %p98_p1 }
   0xb   :  { %p101_p4 = pnand %p100_p3, %p94_p0 }
  0x83   :  { %v35_v7 = vpop.permute.xlu0 %34  ;;  %v55_v9 = vpop.permute.xlu1 %54 }
  0x84   :  { %vm39_vm2 = vcmp.eq.s32.totalorder %v32_v6, %v35_v7  ;;  %vm59_vm3 = vcmp.eq.s32.totalorder %v55_v9, 1 }
  0x85   :  { %v41_v11 = vsel %vm39_vm2, 0.89666665, %v118_v10 }
  0x86   :  { %v49_v12 = vadd.f32 %v87_v8, %v41_v11 }
  0x87   :  { %v38_v13 = vpop.permute.xlu0 %37  ;;  %v58_v16 = vpop.permute.xlu1 %57 }
  0x88   :  { %v61_v15 = vsel %vm59_vm3, %v49_v12, 0.0  ;;  %vm40_vm4 = vcmp.eq.s32.totalorder %v32_v6, %v38_v13  ;;  %vm60_vm5 = vcmp.eq.s32.totalorder %v58_v16, 1 }
  0x89   :  { %v42_v17 = vsel %vm40_vm4, 0.89666665, %v118_v10  ;;  %v65_v20 = vmul.f32 %v61_v15, %v20_v14  ;;  %vm63_vm6 = vcmp.ne.f32.partialorder %v61_v15, 0.0 }
  0x8a   :  { %v50_v18 = vadd.f32 %v87_v8, %v42_v17 }
  0x8b   :  { %v67_v23 = vsel %vm63_vm6, %v65_v20, 0.0 }
  0x8c   :  { %v62_v21 = vsel %vm60_vm5, %v50_v18, 0.0 }
  0x8d   :  { %vm64_vm7 = vcmp.ne.f32.partialorder %v62_v21, 0.0  ;;  %v66_v22 = vmul.f32 %v62_v21, %v21_v19 }
  0x8f   :  { %v68_v24 = vsel %vm64_vm7, %v66_v22, 0.0 }
  0x90   :  { %v69_v25 = vadd.f32 %v68_v24, %v67_v23 }
  0x92   :  { %72 = vst [vmem:[#allocation2] sm:$0xff] %v69_v25 }
  0x93   :  { %104 = shalt.err (!%p101_p4)
}
  0x94   :  { %s105_s24 = scalar_lea.hbm %s170_s3, 128 }
  0x95   :  { %p106_p5 = scmp.ne.s32.totalorder %s170_s3, %s105_s24  ;;  %p109_p6 = scmp.lt.u32.totalorder %s105_s24, %s170_s3 }
  0x97   :  { %p111_p7 = pnand %p109_p6, %p106_p5 }
  0x99   :  { %114 = shalt.err (!%p111_p7)
}
  0x9a   :  { %82 = dma.vmem_to_hbm [thread:$0]  %s80_s21, 128, %s170_s3, [#allocation3]  }
  0x9b   :  { %115 = dma.done.wait [#allocation3], 128  }
  0x9c   :  { %116 = vsyncadd [#allocation3], 4294967168 }
  0x9d   :  { %86 = vsyncpa [#allocation3], 1 }

</bundles_post_ra>
